<compile_context>
chip_gen: v5e
topology: v5e:2x2
jax: 0.10.0
libtpu: 0.0.40
codegen_flags: <defaults>
</compile_context>

<pallas_src>
import functools
import math

import jax
import jax.numpy as jnp
from jax import lax
from jax.experimental import pallas as pl
from jax.experimental.pallas import tpu as pltpu

D = 256
NUM_HEADS = 8
HEAD_DIM = D // NUM_HEADS
N_BINS = 256
VP_K = 3          # variance predictor conv kernel size
LN_EPS = 1e-5
NEG_BIG = 1e9     # additive key-padding mask value (≈ -inf)
VMEM_LIMIT = 32 * 1024 * 1024   # raise v5e's 16 MiB scoped default; safe on v6e/v7x


def _pick_tile(n, cap=1024):
    """Largest power-of-two tile <= cap that divides n; fall back to full extent."""
    for cand in (1024, 512, 256, 128, 64, 32, 16, 8):
        if cand <= cap and cand <= n and n % cand == 0:
            return cand
    return n


# ----------------------------------------------------------------------------
# Kernel 1: dual 2-layer MLP (Linear -> ReLU -> Linear -> ReLU) for both the
# valence and arousal branches.  grid = (branch, row_tile); branch outermost so
# the per-branch weights are DMA'd once and stay resident across all row tiles.
# ----------------------------------------------------------------------------
def _dual_mlp_kernel(x_ref, w1_ref, b1_ref, w2_ref, b2_ref, o_ref):
    x = x_ref[...]                                                       # (TR, D) bf16
    h = jnp.dot(x, w1_ref[0], preferred_element_type=jnp.float32) + b1_ref[0]
    h = jnp.maximum(h, 0.0)
    o = jnp.dot(h.astype(jnp.bfloat16), w2_ref[0],
                preferred_element_type=jnp.float32) + b2_ref[0]
    o = jnp.maximum(o, 0.0)
    o_ref[...] = o[None].astype(o_ref.dtype)


def dual_mlp(feat, w1, b1, w2, b2):
    B, Tv, _ = feat.shape
    R = B * Tv
    feat2 = feat.reshape(R, D).astype(jnp.bfloat16)   # bf16 stream: half HBM traffic
    TR = _pick_tile(R, 1024)
    out = pl.pallas_call(
        _dual_mlp_kernel,
        out_shape=jax.ShapeDtypeStruct((2, R, D), jnp.bfloat16),
        grid=(2, R // TR),          # branch OUTERMOST: weights resident per branch
        in_specs=[
            pl.BlockSpec((TR, D), lambda s, r: (r, 0)),
            pl.BlockSpec((1, D, D), lambda s, r: (s, 0, 0)),
            pl.BlockSpec((1, 1, D), lambda s, r: (s, 0, 0)),
            pl.BlockSpec((1, D, D), lambda s, r: (s, 0, 0)),
            pl.BlockSpec((1, 1, D), lambda s, r: (s, 0, 0)),
        ],
        out_specs=pl.BlockSpec((1, TR, D), lambda s, r: (s, r, 0)),
        compiler_params=pltpu.CompilerParams(
            dimension_semantics=("parallel", "parallel"),
            vmem_limit_bytes=VMEM_LIMIT),
    )(feat2, w1, b1, w2, b2)
    return out.reshape(2, B, Tv, D)


# ----------------------------------------------------------------------------
# Kernel 2: dual multi-head attention (8 heads, model dim 256), inference mode.
# Packed weights: wq (2, D, D), wkv (2, D, 2D) = [W_K | W_V], wo (2, D, D).
# grid = (branch, batch, query_tile), branch outermost (weights stay resident).
# ----------------------------------------------------------------------------
def _dual_mha_kernel(q_ref, kv_ref, mask_ref,
                     wq_ref, bq_ref, wkv_ref, bkv_ref, wo_ref, bo_ref, o_ref):
    q = q_ref[0]                                   # (TQ, D) bf16
    kv = kv_ref[0, 0]                              # (Tv, D) bf16
    neg_bias = mask_ref[0] * (-NEG_BIG)            # (1, Tv) additive key-padding bias
    scale = 1.0 / math.sqrt(HEAD_DIM)

    # lane-dense projections: one 256x256 (Q) + one 256x512 (packed K|V) MXU matmul
    Q = jnp.dot(q, wq_ref[0], preferred_element_type=jnp.float32) + bq_ref[0]
    Q = (Q * scale).astype(jnp.bfloat16)           # fold 1/sqrt(dh) into Q once
    KV = jnp.dot(kv, wkv_ref[0], preferred_element_type=jnp.float32) + bkv_ref[0]
    K = KV[:, :D].astype(jnp.bfloat16)             # 256-lane offsets: vreg-aligned slices
    V = KV[:, D:].astype(jnp.bfloat16)
    Wo = wo_ref[0]                                 # (D, D) bf16

    acc = jnp.zeros((q.shape[0], D), jnp.float32)
    # TODO(synk): for very long Tv switch to a flash-style online-softmax loop over Tv blocks.
    for h in range(NUM_HEADS):
        sl = slice(h * HEAD_DIM, (h + 1) * HEAD_DIM)
        s = lax.dot_general(Q[:, sl], K[:, sl], (((1,), (1,)), ((), ())),
                            preferred_element_type=jnp.float32)          # (TQ, Tv)
        s = s + neg_bias
        s = s - jnp.max(s, axis=-1, keepdims=True)
        p = jnp.exp(s)
        p = p * pl.reciprocal(jnp.sum(p, axis=-1, keepdims=True), approx=True)
        ctx_h = jnp.dot(p.astype(jnp.bfloat16), V[:, sl],
                        preferred_element_type=jnp.float32)              # (TQ, dh)
        # per-head accumulate through the output projection: no 8-way 32-lane concat
        acc = acc + jnp.dot(ctx_h.astype(jnp.bfloat16), Wo[sl, :],
                            preferred_element_type=jnp.float32)
    out = acc + bo_ref[0]
    o_ref[...] = out[None, None].astype(o_ref.dtype)


def dual_mha(x, kv, key_padding_mask, ap):
    B, T, _ = x.shape
    Tv = kv.shape[2]
    TQ = _pick_tile(T, 512)
    x_bf = x.astype(jnp.bfloat16)
    mask_f = key_padding_mask.astype(jnp.float32).reshape(B, 1, Tv)

    def wspec(shp):
        return pl.BlockSpec(shp, lambda s, b, qi: (s, 0, 0))

    return pl.pallas_call(
        _dual_mha_kernel,
        out_shape=jax.ShapeDtypeStruct((2, B, T, D), jnp.bfloat16),
        grid=(2, B, T // TQ),       # branch OUTERMOST: per-branch weights stay resident
        in_specs=[
            pl.BlockSpec((1, TQ, D), lambda s, b, qi: (b, qi, 0)),       # query = x
            pl.BlockSpec((1, 1, Tv, D), lambda s, b, qi: (s, b, 0, 0)),  # key/value
            pl.BlockSpec((1, 1, Tv), lambda s, b, qi: (b, 0, 0)),        # padding mask
            wspec((1, D, D)), wspec((1, 1, D)),                          # wq, bq
            wspec((1, D, 2 * D)), wspec((1, 1, 2 * D)),                  # wkv, bkv (packed)
            wspec((1, D, D)), wspec((1, 1, D)),                          # wo, bo
        ],
        out_specs=pl.BlockSpec((1, 1, TQ, D), lambda s, b, qi: (s, b, qi, 0)),
        compiler_params=pltpu.CompilerParams(
            dimension_semantics=("parallel", "parallel", "parallel"),
            vmem_limit_bytes=VMEM_LIMIT),
    )(x_bf, kv, mask_f,
      ap["wq"], ap["bq"], ap["wkv"], ap["bkv"], ap["wo"], ap["bo"])


# ----------------------------------------------------------------------------
# Kernel 3: fused VariancePredictor (both branches stacked along sublanes, shared
# weights as in the reference) + bucketize + embedding lookup + residual add.
# Conv weights packed as (D, 3D) = [W_{t-1} | W_t | W_{t+1}] on the out axis.
# ----------------------------------------------------------------------------
def _conv3_packed(h, w_ref, b_ref, not_first, not_last, t2):
    """y[t] = x[t-1]@W0 + x[t]@W1 + x[t+1]@W2 + b, zero-padded at each branch's edges."""
    a = jnp.dot(h.astype(jnp.bfloat16), w_ref[...],
                preferred_element_type=jnp.float32)                      # (2T, 3D)
    y0 = pltpu.roll(a[:, 0:D], shift=1, axis=0) * not_first              # x[t-1] tap
    y2 = pltpu.roll(a[:, 2 * D:3 * D], shift=t2 - 1, axis=0) * not_last  # x[t+1] tap
    return y0 + a[:, D:2 * D] + y2 + b_ref[...]


def _layer_norm(h, g_ref, be_ref):
    mu = jnp.mean(h, axis=-1, keepdims=True)
    ms = jnp.mean(h * h, axis=-1, keepdims=True)   # independent reductions (better overlap)
    var = ms - mu * mu
    return (h - mu) * lax.rsqrt(var + LN_EPS) * g_ref[...] + be_ref[...]


def _vp_fused_kernel(ctx_ref, x_ref, keep_ref, ptgt_ref, etgt_ref,
                     pctrl_ref, ectrl_ref,
                     w1_ref, b1_ref, g1_ref, be1_ref,
                     w2_ref, b2_ref, g2_ref, be2_ref,
                     wl_ref, bl_ref,
                     pbins_ref, ebins_ref, pemb_ref, eemb_ref,
                     out_ref, ppred_ref, epred_ref, *, use_gt):
    T = x_ref.shape[1]
    T2 = 2 * T
    keep = keep_ref[0]                          # (T, 1), 1.0 where NOT masked

    # Hoisted iotas / per-branch edge masks (built once, reused by both conv layers).
    row = lax.broadcasted_iota(jnp.int32, (T2, D), 0)
    not_first = jnp.logical_and(row != 0, row != T).astype(jnp.float32)
    not_last = jnp.logical_and(row != T - 1, row != T2 - 1).astype(jnp.float32)
    lane = lax.broadcasted_iota(jnp.int32, (T, N_BINS), 1)

    # Both branches (valence->pitch, arousal->energy) stacked along sublanes: each conv
    # is ONE (2T,256)@(256,768) MXU matmul; edge masks keep rolls from leaking across
    # the branch boundary.
    h = ctx_ref[0]                              # (2T, D) bf16
    h = _conv3_packed(h, w1_ref, b1_ref, not_first, not_last, T2)
    h = jnp.maximum(h, 0.0)
    h = _layer_norm(h, g1_ref, be1_ref)
    h = _conv3_packed(h, w2_ref, b2_ref, not_first, not_last, T2)
    h = jnp.maximum(h, 0.0)
    h = _layer_norm(h, g2_ref, be2_ref)
    pred2 = jnp.sum(h * wl_ref[...], axis=-1, keepdims=True) + bl_ref[...]   # (2T, 1)

    acc = x_ref[0].astype(jnp.float32)          # running output = x + emb_p + emb_e
    branch = (
        (0, pbins_ref, pemb_ref, pctrl_ref, ptgt_ref, ppred_ref),   # pitch  <- valence ctx
        (1, ebins_ref, eemb_ref, ectrl_ref, etgt_ref, epred_ref),   # energy <- arousal ctx
    )
    for br, bins_ref, emb_ref, ctrl_ref, tgt_ref, pred_ref in branch:
        pred = pred2[br * T:(br + 1) * T] * keep                 # masked_fill(mask, 0)
        if use_gt:
            src = tgt_ref[0]                                     # quantize ground truth
        else:
            pred = pred * ctrl_ref[...]                          # control scaling
            src = pred
        pred_ref[...] = pred[None].astype(pred_ref.dtype)

        # torch.bucketize(v, bins) == number of bins strictly less than v
        idx = jnp.sum((src > bins_ref[...]).astype(jnp.int32),
                      axis=-1, keepdims=True)                    # (T, 1)
        onehot = (lane == idx).astype(jnp.bfloat16)              # (T, N_BINS)
        acc = acc + jnp.dot(onehot, emb_ref[...],
                            preferred_element_type=jnp.float32)  # embedding lookup on MXU
    out_ref[...] = acc[None].astype(out_ref.dtype)


def vp_quant_embed(ctx, x, src_masks, pitch_target, energy_target, vp,
                   pbins, ebins, pemb, eemb, p_control, e_control, use_gt):
    B, T, _ = x.shape
    # stack both branch contexts along the time (sublane) axis -> (B, 2T, D)
    ctx2 = jnp.transpose(ctx, (1, 0, 2, 3)).reshape(B, 2 * T, D)
    keep = jnp.logical_not(src_masks).astype(jnp.float32).reshape(B, T, 1)
    ptgt = pitch_target.astype(jnp.float32).reshape(B, T, 1)
    etgt = energy_target.astype(jnp.float32).reshape(B, T, 1)
    pctrl = jnp.full((1, 1), p_control, jnp.float32)
    ectrl = jnp.full((1, 1), e_control, jnp.float32)

    row_d = pl.BlockSpec((1, D), lambda b: (0, 0))
    one = pl.BlockSpec((1, 1), lambda b: (0, 0))
    col_t = pl.BlockSpec((1, T, 1), lambda b: (b, 0, 0))
    w_conv = pl.BlockSpec((D, VP_K * D), lambda b: (0, 0))
    kernel = functools.partial(_vp_fused_kernel, use_gt=bool(use_gt))
    # TODO(synk): add a T-tile grid axis with +/-1-row conv halos (replacing roll+edge-mask)
    # for very long T / small B so the per-batch live set fits v7x's 64 MiB VMEM.
    out, ppred, epred = pl.pallas_call(
        kernel,
        out_shape=(
            jax.ShapeDtypeStruct((B, T, D), x.dtype),
            jax.ShapeDtypeStruct((B, T, 1), jnp.float32),
            jax.ShapeDtypeStruct((B, T, 1), jnp.float32),
        ),
        grid=(B,),
        in_specs=[
            pl.BlockSpec((1, 2 * T, D), lambda b: (b, 0, 0)),     # stacked contexts
            pl.BlockSpec((1, T, D), lambda b: (b, 0, 0)),         # x (residual)
            col_t, col_t, col_t,                                  # keep, pitch tgt, energy tgt
            one, one,                                             # p_control, e_control
            w_conv, row_d, row_d, row_d,                          # conv1 + LN1
            w_conv, row_d, row_d, row_d,                          # conv2 + LN2
            row_d, one,                                           # final linear
            pl.BlockSpec((1, N_BINS), lambda b: (0, 0)),          # pitch bins (padded)
            pl.BlockSpec((1, N_BINS), lambda b: (0, 0)),          # energy bins (padded)
            pl.BlockSpec((N_BINS, D), lambda b: (0, 0)),          # pitch embedding table
            pl.BlockSpec((N_BINS, D), lambda b: (0, 0)),          # energy embedding table
        ],
        out_specs=(
            pl.BlockSpec((1, T, D), lambda b: (b, 0, 0)),
            col_t, col_t,
        ),
        compiler_params=pltpu.CompilerParams(
            dimension_semantics=("parallel",), vmem_limit_bytes=VMEM_LIMIT),
    )(ctx2, x, keep, ptgt, etgt, pctrl, ectrl,
      vp["w1"], vp["b1"], vp["g1"], vp["be1"],
      vp["w2"], vp["b2"], vp["g2"], vp["be2"],
      vp["wl"], vp["bl"], pbins, ebins, pemb, eemb)
    return out, ppred[..., 0], epred[..., 0]


# ----------------------------------------------------------------------------
# Deterministic parameter init (shapes follow the module's __init__; matmul
# weights stored in bf16, biases / LN params / bins in f32).
# ----------------------------------------------------------------------------
def init_params(key):
    ks = iter(jax.random.split(key, 64))
    bf = jnp.bfloat16

    def rnd(shape, scale=0.05, dtype=jnp.float32):
        return (jax.random.normal(next(ks), shape, jnp.float32) * scale).astype(dtype)

    p = {}
    # emo_fc_2_val / emo_fc_2_aro, branch 0 = valence, 1 = arousal
    p["emo_w1"] = rnd((2, D, D), dtype=bf)
    p["emo_b1"] = rnd((2, 1, D))
    p["emo_w2"] = rnd((2, D, D), dtype=bf)
    p["emo_b2"] = rnd((2, 1, D))
    # valence_attention / arousal_attention (heads packed lane-dense; K|V packed 512-wide)
    p["attn"] = dict(
        wq=rnd((2, D, D), dtype=bf), bq=rnd((2, 1, D)),
        wkv=rnd((2, D, 2 * D), dtype=bf), bkv=rnd((2, 1, 2 * D)),
        wo=rnd((2, D, D), dtype=bf), bo=rnd((2, 1, D)))
    # pitch_predictor (the reference also uses it for the energy prediction)
    p["vp"] = dict(
        w1=rnd((D, VP_K * D), dtype=bf), b1=rnd((1, D)),
        g1=jnp.ones((1, D), jnp.float32), be1=jnp.zeros((1, D), jnp.float32),
        w2=rnd((D, VP_K * D), dtype=bf), b2=rnd((1, D)),
        g2=jnp.ones((1, D), jnp.float32), be2=jnp.zeros((1, D), jnp.float32),
        wl=rnd((1, D)), bl=jnp.zeros((1, 1), jnp.float32))
    # bins (stats.json replaced by fixed [-1, 1] range), padded to 256 lanes
    big = jnp.array([3.0e38], jnp.float32)
    p["pitch_bins"] = jnp.concatenate(
        [jnp.linspace(-1.0, 1.0, N_BINS - 1), big]).reshape(1, N_BINS)
    p["energy_bins"] = jnp.concatenate(
        [jnp.linspace(-1.0, 1.0, N_BINS - 1), big]).reshape(1, N_BINS)
    p["pitch_emb"] = rnd((N_BINS, D), dtype=bf)
    p["energy_emb"] = rnd((N_BINS, D), dtype=bf)
    return p


# ----------------------------------------------------------------------------
# Forward pass (main path, train_mode != 'pretrain', scale_fusion=True).
# ----------------------------------------------------------------------------
def prosody_forward(params, x, src_masks, visual_masks, pitch_target,
                    energy_target, Feature_256, p_control=1.0, e_control=1.0,
                    useGT=False):
    # branch 0 = valence / pitch, branch 1 = arousal / energy
    emo = dual_mlp(Feature_256, params["emo_w1"], params["emo_b1"],
                   params["emo_w2"], params["emo_b2"])       # (2, B, Tv, D)
    ctx = dual_mha(x, emo, visual_masks, params["attn"])     # (2, B, T, D)
    output, pitch_prediction, energy_prediction = vp_quant_embed(
        ctx, x, src_masks, pitch_target, energy_target, params["vp"],
        params["pitch_bins"], params["energy_bins"],
        params["pitch_emb"], params["energy_emb"],
        p_control, e_control, useGT)
    return output, pitch_prediction, energy_prediction


if __name__ == "__main__":
    key = jax.random.PRNGKey(0)
    k_param, k_x, k_f, k_p, k_e = jax.random.split(key, 5)
    B, T, Tv = 2, 8, 8

    params = init_params(k_param)
    x = jax.random.normal(k_x, (B, T, D), jnp.float32)
    Feature_256 = jax.random.normal(k_f, (B, Tv, D), jnp.float32)
    src_masks = jnp.zeros((B, T), bool).at[:, T - 2:].set(True)
    visual_masks = jnp.zeros((B, Tv), bool).at[:, Tv - 1:].set(True)
    pitch_target = jax.random.normal(k_p, (B, T), jnp.float32)
    energy_target = jax.random.normal(k_e, (B, T), jnp.float32)

    out, pitch_pred, energy_pred = prosody_forward(
        params, x, src_masks, visual_masks, pitch_target, energy_target,
        Feature_256, p_control=1.0, e_control=1.0, useGT=False)
    jax.block_until_ready((out, pitch_pred, energy_pred))

    assert out.shape == (B, T, D)
    assert pitch_pred.shape == (B, T)
    assert energy_pred.shape == (B, T)
    assert bool(jnp.all(jnp.isfinite(out)))
    assert bool(jnp.all(jnp.isfinite(pitch_pred)))
    assert bool(jnp.all(jnp.isfinite(energy_pred)))
    print("KERNEL_OK")
</pallas_src>

<mosaic_0001>
module attributes {stable_mosaic.version = 11 : i64} {
  func.func @_dual_mlp_kernel(%arg0: i32, %arg1: i32, %arg2: memref<16x256xbf16, #tpu.memory_space<vmem>>, %arg3: memref<1x256x256xbf16, #tpu.memory_space<vmem>>, %arg4: memref<1x1x256xf32, #tpu.memory_space<vmem>>, %arg5: memref<1x256x256xbf16, #tpu.memory_space<vmem>>, %arg6: memref<1x1x256xf32, #tpu.memory_space<vmem>>, %arg7: memref<1x16x256xbf16, #tpu.memory_space<vmem>>) attributes {dimension_semantics = [#tpu.dimension_semantics<parallel>, #tpu.dimension_semantics<parallel>], iteration_bounds = array<i64: 2, 1>, scalar_prefetch = 0 : i64, scratch_operands = 0 : i64, tpu.core_type = #tpu.core_type<tc>, window_params = [{transform_indices = @transform_0, window_bounds = array<i64: 16, 256>}, {transform_indices = @transform_1, window_bounds = array<i64: 1, 256, 256>}, {transform_indices = @transform_2, window_bounds = array<i64: 1, 1, 256>}, {transform_indices = @transform_3, window_bounds = array<i64: 1, 256, 256>}, {transform_indices = @transform_4, window_bounds = array<i64: 1, 1, 256>}, {transform_indices = @transform_5, window_bounds = array<i64: 1, 16, 256>}]} {
    %c0 = arith.constant 0 : index
    %c0_0 = arith.constant 0 : index
    %0 = vector.load %arg2[%c0, %c0_0] : memref<16x256xbf16, #tpu.memory_space<vmem>>, vector<16x256xbf16>
    %c0_1 = arith.constant 0 : index
    %c0_2 = arith.constant 0 : index
    %c0_3 = arith.constant 0 : index
    %1 = vector.load %arg3[%c0_1, %c0_2, %c0_3] : memref<1x256x256xbf16, #tpu.memory_space<vmem>>, vector<1x256x256xbf16>
    %2 = vector.shape_cast %1 : vector<1x256x256xbf16> to vector<256x256xbf16>
    %cst = arith.constant dense<0.000000e+00> : vector<16x256xf32>
    %3 = tpu.matmul %0, %2, %cst {dimension_numbers = #tpu.dot_dimension_numbers<[1], [0], [0], [1], [0, 0, 1, 1], [], []>} : vector<16x256xbf16>, vector<256x256xbf16>, vector<16x256xf32> -> vector<16x256xf32>
    %c0_4 = arith.constant 0 : index
    %c0_5 = arith.constant 0 : index
    %c0_6 = arith.constant 0 : index
    %4 = vector.load %arg4[%c0_4, %c0_5, %c0_6] : memref<1x1x256xf32, #tpu.memory_space<vmem>>, vector<1x1x256xf32>
    %5 = vector.shape_cast %4 : vector<1x1x256xf32> to vector<1x256xf32>
    %6 = vector.broadcast %5 : vector<1x256xf32> to vector<16x256xf32>
    %7 = arith.addf %3, %6 : vector<16x256xf32>
    %cst_7 = arith.constant 0.000000e+00 : f32
    %8 = vector.broadcast %cst_7 : f32 to vector<16x256xf32>
    %9 = arith.maximumf %7, %8 : vector<16x256xf32>
    %10 = arith.truncf %9 : vector<16x256xf32> to vector<16x256xbf16>
    %c0_8 = arith.constant 0 : index
    %c0_9 = arith.constant 0 : index
    %c0_10 = arith.constant 0 : index
    %11 = vector.load %arg5[%c0_8, %c0_9, %c0_10] : memref<1x256x256xbf16, #tpu.memory_space<vmem>>, vector<1x256x256xbf16>
    %12 = vector.shape_cast %11 : vector<1x256x256xbf16> to vector<256x256xbf16>
    %cst_11 = arith.constant dense<0.000000e+00> : vector<16x256xf32>
    %13 = tpu.matmul %10, %12, %cst_11 {dimension_numbers = #tpu.dot_dimension_numbers<[1], [0], [0], [1], [0, 0, 1, 1], [], []>} : vector<16x256xbf16>, vector<256x256xbf16>, vector<16x256xf32> -> vector<16x256xf32>
    %c0_12 = arith.constant 0 : index
    %c0_13 = arith.constant 0 : index
    %c0_14 = arith.constant 0 : index
    %14 = vector.load %arg6[%c0_12, %c0_13, %c0_14] : memref<1x1x256xf32, #tpu.memory_space<vmem>>, vector<1x1x256xf32>
    %15 = vector.shape_cast %14 : vector<1x1x256xf32> to vector<1x256xf32>
    %16 = vector.broadcast %15 : vector<1x256xf32> to vector<16x256xf32>
    %17 = arith.addf %13, %16 : vector<16x256xf32>
    %cst_15 = arith.constant 0.000000e+00 : f32
    %18 = vector.broadcast %cst_15 : f32 to vector<16x256xf32>
    %19 = arith.maximumf %17, %18 : vector<16x256xf32>
    %20 = vector.shape_cast %19 : vector<16x256xf32> to vector<1x16x256xf32>
    %21 = arith.truncf %20 : vector<1x16x256xf32> to vector<1x16x256xbf16>
    %c0_16 = arith.constant 0 : index
    %c0_17 = arith.constant 0 : index
    %c0_18 = arith.constant 0 : index
    %22 = vector.load %arg7[%c0_16, %c0_17, %c0_18] : memref<1x16x256xbf16, #tpu.memory_space<vmem>>, vector<1x16x256xbf16>
    tpu.vector_store %arg7[%c0_16, %c0_17, %c0_18], %21 {strides = array<i32>} : memref<1x16x256xbf16, #tpu.memory_space<vmem>>, vector<1x16x256xbf16>,
    return
  }
  func.func @transform_0(%arg0: i32, %arg1: i32) -> (i32, i32) {
    %c0_i32 = arith.constant 0 : i32
    %c0_i32_0 = arith.constant 0 : i32
    return %arg1, %c0_i32 : i32, i32
  }
  func.func @transform_1(%arg0: i32, %arg1: i32) -> (i32, i32, i32) {
    %c0_i32 = arith.constant 0 : i32
    %c0_i32_0 = arith.constant 0 : i32
    %c0_i32_1 = arith.constant 0 : i32
    return %arg0, %c0_i32, %c0_i32_0 : i32, i32, i32
  }
  func.func @transform_2(%arg0: i32, %arg1: i32) -> (i32, i32, i32) {
    %c0_i32 = arith.constant 0 : i32
    %c0_i32_0 = arith.constant 0 : i32
    %c0_i32_1 = arith.constant 0 : i32
    return %arg0, %c0_i32, %c0_i32_0 : i32, i32, i32
  }
  func.func @transform_3(%arg0: i32, %arg1: i32) -> (i32, i32, i32) {
    %c0_i32 = arith.constant 0 : i32
    %c0_i32_0 = arith.constant 0 : i32
    %c0_i32_1 = arith.constant 0 : i32
    return %arg0, %c0_i32, %c0_i32_0 : i32, i32, i32
  }
  func.func @transform_4(%arg0: i32, %arg1: i32) -> (i32, i32, i32) {
    %c0_i32 = arith.constant 0 : i32
    %c0_i32_0 = arith.constant 0 : i32
    %c0_i32_1 = arith.constant 0 : i32
    return %arg0, %c0_i32, %c0_i32_0 : i32, i32, i32
  }
  func.func @transform_5(%arg0: i32, %arg1: i32) -> (i32, i32, i32) {
    %c0_i32 = arith.constant 0 : i32
    %c0_i32_0 = arith.constant 0 : i32
    return %arg0, %arg1, %c0_i32 : i32, i32, i32
  }
}

</mosaic_0001>

<bundles_post_ra>
// kernel: tpu_custom_call.1
= control target key start
LH: loop header
LB: loop body
LE: loop exit
PB: predicated region body
PF: predicated region fallthrough
CT: control target
= control target key end

     0   :  { %s2182_s0 = inlined_call_operand.hbm [shape: bf16[16,256], index: 0, kind: input, shape index: {}]   ;;  %s2183_s1 = inlined_call_operand.hbm [shape: bf16[2,256,256], index: 1, kind: input, shape index: {}]   ;;  %s2184_s2 = inlined_call_operand.hbm [shape: f32[2,1,256], index: 2, kind: input, shape index: {}]   ;;  %s2185_s3 = inlined_call_operand.hbm [shape: bf16[2,256,256], index: 3, kind: input, shape index: {}]   ;;  %s2186_s4 = inlined_call_operand.hbm [shape: f32[2,1,256], index: 4, kind: input, shape index: {}]   ;;  %s2187_s5 = inlined_call_operand.hbm [shape: bf16[2,16,256], index: 5, kind: output, shape index: {}]  }
   0x1   :  { %2196 = sst [smem:[#allocation22_spill]] %s2182_s0 }
   0x2   :  { %2197 = sst [smem:[#allocation23_spill]] %s2183_s1 }
   0x3   :  { %2198 = sst [smem:[#allocation24_spill]] %s2185_s3 }
   0x4   :  { %10 = vsyncpa [#allocation3], 0 }
   0x5   :  { %11 = vsyncpa [#allocation6], 0 }
   0x6   :  { %13 = vsyncpa [#allocation6 + $0x1], 0 }
   0x7   :  { %14 = vsyncpa [#allocation9], 0 }
   0x8   :  { %16 = vsyncpa [#allocation9 + $0x1], 0 }
   0x9   :  { %17 = vsyncpa [#allocation4], 0 }
   0xa   :  { %19 = vsyncpa [#allocation4 + $0x1], 0  ;;  %s1844_s18 = smov 0   ;;  %s1846_s19 = smov 0  }
   0xb   :  { %s1848_s20 = smov 0   ;;  %s1850_s21 = smov 0  }
   0xc   :  { %s1852_s22 = smov 0   ;;  %s1854_s23 = smov 0  }
   0xd LB: > { %2199 = sst [smem:[#allocation16_spill]] %s1795_s20  ;;  %s37_s24 = sadd.s32 1, %s1803_s22  ;;  %s1807_s23 = sphi %s1854_s23, %s25_s23   ;;  %s1803_s22 = sphi %s1852_s22, %s2221_s22   ;;  %s1799_s21 = sphi %s1850_s21, %s2220_s21   ;;  %s1795_s20 = sphi %s1848_s20, %s2219_s20   ;;  %s1791_s19 = sphi %s1846_s19, %s2223_s19   ;;  %s1787_s18 = sphi %s1844_s18, %s2222_s18  }
   0xe   : > { %2200 = sst [smem:[#allocation17_spill]] %s1803_s22  ;;  %s70_s25 = sadd.s32 1, %s1795_s20 }
   0xf   : > { %2201 = sst [smem:[#allocation18_spill]] %s1807_s23  ;;  %p39_p0 = scmp.ge.s32.totalorder %s37_s24, 2 }
  0x10   : > { %p77_p1 = scmp.ne.s32.totalorder %s1795_s20, %s1791_s19  ;;  %p78_p2 = scmp.eq.s32.totalorder %s1807_s23, 0 }
  0x11   : > { %s2225_s24 = smov (%p39_p0, %s37_s24), 0  ;;  %p1119_p4 = scmp.ge.s32.totalorder %s1807_s23, 2 }
  0x12   : > { %2202 = sst [smem:[#allocation19_spill]] %s2225_s24  ;;  %p1884_p3 = por %p78_p2, %p77_p1 }
  0x13   : > { %s67_s27 = ssub.s32 %s1803_s22, %s2225_s24  ;;  %p1511_p6 = scmp.lt.s32.totalorder %s1807_s23, 2 }
  0x14   : > { %p68_p5 = scmp.eq.s32.totalorder %s67_s27, 0  ;;  %s231_s28 = sand.u32 1, %s1807_s23  }
  0x15   : > { %s233_s29 = sand.u32 1, %s1795_s20   ;;  %s1406_s7 = sshll.u32 %s1803_s22, 8 }
  0x16   : > { %s1895_s30 = scalar_select %p68_p5, %s1795_s20, %s70_s25  }
  0x17   : > { %s1120_s6 = sshll.u32 %s233_s29, 8  ;;  %s2205_s1 = sld [smem:[#allocation23_spill]] }
  0x18   : > { %2204 = sst [smem:[#allocation20_spill]] %s1895_s30  ;;  %s235_s11 = scalar_lea.vmem [#allocation5], %s1120_s6 }
  0x19   : > { %s243_s12 = sshll.u32 %s235_s11, 4  ;;  %p1905_p7 = pnand %p1511_p6, %p1884_p3  ;;  %s244_s12 = int_to_ptr.vmem [resolvable:$true] %s243_s12 }
  0x1a   : > { %s2207_s3 = sld [smem:[#allocation24_spill]]  ;;  %s1912_s25 = scalar_lea.sflag [#allocation6], %s231_s28 }
  0x1b   : > { %s2188_s27 = smov 128   ;;  %s2189_s8 = smov 8  }
  0x1c   : > { %s276_s9 = scalar_lea.vmem [#allocation8], %s1120_s6  ;;  %s1929_s11 = sadd.s32 4294967295, %s1807_s23  }
  0x1d   : > { %s240_s10 = scalar_lea.hbm %s2205_s1, %s1406_s7  ;;  %p83_p8 = scmp.ne.s32.totalorder %s1791_s19, %s1787_s18 }
  0x1e   : > { %s241_s13 = sshll.u32 %s240_s10, 4  ;;  %s284_s10 = sshll.u32 %s276_s9, 4  ;;  %s242_s13 = int_to_ptr.hbm [resolvable:$true] %s241_s13  ;;  %s285_s10 = int_to_ptr.vmem [resolvable:$true] %s284_s10 }
  0x1f   : > { %1496 = dma.hbm_to_vmem [thread:$0]  (!%p1905_p7), %s242_s13, 4096, %s244_s12, %s1912_s25, %s2188_s27, %s2188_s27, %s2189_s8  }
  0x20   : > { %s281_s17 = scalar_lea.hbm %s2207_s3, %s1406_s7  ;;  %s1920_s7 = scalar_lea.sflag [#allocation9], %s231_s28 }
  0x21   : > { %s282_s26 = sshll.u32 %s281_s17, 4  ;;  %s1116_s12 = sadd.s32 4294967294, %s1807_s23   ;;  %s283_s26 = int_to_ptr.hbm [resolvable:$true] %s282_s26 }
  0x22   : > { %1502 = dma.hbm_to_vmem [thread:$0]  (!%p1905_p7), %s283_s26, 4096, %s285_s10, %s1920_s7, %s2188_s27, %s2188_s27, %s2189_s8  }
  0x23   : > { %p84_p9 = scmp.eq.s32.totalorder %s1929_s11, 0  ;;  %p187_p10 = scmp.eq.s32.totalorder %s1929_s11, 1 }
  0x24   : > { %p193_p11 = scmp.eq.s32.totalorder %s1116_s12, 1  ;;  %p1117_p13 = scmp.ge.s32.totalorder %s1807_s23, 1 }
  0x25   : > { %p1938_p12 = por %p84_p9, %p83_p8  ;;  %p1946_p0 = por %p187_p10, %p77_p1 }
  0x26   : > { %p1950_p2 = por %p193_p11, %p83_p8  ;;  %p200_p3 = scmp.lt.s32.totalorder %s1807_s23, 3 }
  0x27   : > { %s2212_s0 = sld [smem:[#allocation22_spill]]  ;;  %s1811_s9 = smov [#allocation2]  }
  0x28   : > { %s2210_s13 = scalar_select %p1950_p2, 1, 0 }
  0x29   : > { %p1958_p5 = pnand %p1117_p13, %p200_p3  ;;  %s217_s10 = sshll.u32 %s1811_s9, 4  ;;  %s218_s10 = int_to_ptr.vmem [resolvable:$true] %s217_s10 }
  0x2a   : > { %2211 = sst [smem:[#allocation21_spill]] %s2210_s13  ;;  %s1123_s12 = sshll.u32 %s233_s29, 1 }
  0x2b   : > { %p1489_p1 = pneg %p1958_p5  ;;  %s1124_s27 = sshll.u32 %s1803_s22, 1 }
  0x2c   : > { %s261_s8 = scalar_lea.hbm %s2184_s2, %s1124_s27  ;;  %s257_s1 = scalar_lea.vmem [#allocation7], %s1123_s12 }
  0x2d   : > { %s215_s17 = sshll.u32 %s2212_s0, 4  ;;  %p1490_p6 = pnand %p1489_p1, %p84_p9  ;;  %s216_s17 = int_to_ptr.hbm [resolvable:$true] %s215_s17 }
  0x2e   : > { %s263_s0 = sshll.u32 %s261_s8, 4  ;;  %s265_s3 = sshll.u32 %s257_s1, 4  ;;  %s264_s0 = int_to_ptr.hbm [resolvable:$true] %s263_s0  ;;  %s266_s3 = int_to_ptr.vmem [resolvable:$true] %s265_s3 }
  0x2f   : > { %s2214_s24 = smov 8   ;;  %s2215_s9 = smov 128  }
  0x30   : > { %1492 = dma.hbm_to_vmem [thread:$0]  (!%p1490_p6), %s216_s17, 256, %s218_s10, [#allocation3], %s2215_s9, %s2215_s9, %s2214_s24  }
  0x31   : > { %1499 = dma.hbm_to_vmem [thread:$0]  (!%p1905_p7), %s264_s0, 32, %s266_s3, %s1912_s25  }
  0x32   : > { %s302_s30 = scalar_lea.hbm %s2186_s4, %s1124_s27  ;;  %s298_s20 = scalar_lea.vmem [#allocation10], %s1123_s12 }
  0x33   : > { %s306_s23 = sshll.u32 %s298_s20, 4  ;;  %s304_s13 = sshll.u32 %s302_s30, 4  ;;  %s307_s23 = int_to_ptr.vmem [resolvable:$true] %s306_s23  ;;  %s305_s13 = int_to_ptr.hbm [resolvable:$true] %s304_s13 }
  0x34   : > { %1505 = dma.hbm_to_vmem [thread:$0]  (!%p1905_p7), %s305_s13, 32, %s307_s23, %s1920_s7  }
  0x35   : > { %315 = sbr.rel (%p1958_p5) target bundleno = 400 (0x190), region = 40 }
  0x3a   : > { %1770 = dma.done.wait (%p84_p9), [#allocation3], 256  }
  0x3b   : > { %1772 = vsyncadd (%p84_p9), [#allocation3], 4294967040  ;;  %s322_s0 = sand.u32 1, %s1929_s11   ;;  %s1992_s1 = sand.u32 1, %s1791_s19  }
  0x3c   : > { %s1132_s3 = sshll.u32 %s1992_s1, 8  ;;  %s323_s20 = scalar_lea.sflag [#allocation6], %s322_s0 }
  0x3d   : > { %s1995_s22 = scalar_lea.vmem [#allocation5], %s1132_s3 }
  0x3e   : > { %1774 = dma.done.wait (%p1938_p12), %s323_s20, 4128  }
  0x3f   : > { %1776 = vsyncadd (%p1938_p12), %s323_s20, 4294963168  ;;  %s1133_s23 = sshll.u32 %s1992_s1, 1  ;;  %s343_s30 = scalar_lea.sflag [#allocation9], %s322_s0 }
  0x40   : > { %s2004_s24 = scalar_lea.vmem [#allocation7], %s1133_s23  ;;  %s2006_s14 = scalar_lea.vmem [#allocation8], %s1132_s3 }
  0x41   : > { %1778 = dma.done.wait (%p1938_p12), %s343_s30, 4128  }
  0x42   : > { %1780 = vsyncadd (%p1938_p12), %s343_s30, 4294963168  ;;  %v1203_v0 = vld [vmem:[%s1995_s22 + $0x70] sm:$0xf]  ;;  %v1425_v1 = vld [vmem:[%s1995_s22 + $0x74] sm:$0xf0]  ;;  %s356_s25 = scalar_lea.vmem [#allocation10], %s1133_s23 }
  0x43   : > { %v1267_v2 = vld [vmem:[%s1995_s22 + $0xf0] sm:$0xf]  ;;  %v1204_v3 = vor.u32 %v1425_v1, %v1203_v0  ;;  %v1441_v4 = vld [vmem:[%s1995_s22 + $0xf4] sm:$0xf0]  ;;  %v1424_v5 = vld [vmem:[%s1995_s22 + $0x74] sm:$0xf] }
  0x44   : > { %v1205_v6 = vld [vmem:[%s1995_s22 + $0x78] sm:$0xf0]  ;;  %v1268_v7 = vor.u32 %v1441_v4, %v1267_v2  ;;  %v1440_v9 = vld [vmem:[%s1995_s22 + $0xf4] sm:$0xf]  ;;  %v1195_v11 = vld [vmem:[%s1995_s22 + $0x60] sm:$0xf] }
  0x45   : > { %v1208_v8 = vor.u32 %v1424_v5, %v1205_v6  ;;  %v1269_v10 = vld [vmem:[%s1995_s22 + $0xf8] sm:$0xf0]  ;;  %611 = vmatpush.bf16.msra.mxu0 %v1204_v3  ;;  %v1423_v13 = vld [vmem:[%s1995_s22 + $0x64] sm:$0xf0]  ;;  %v1259_v14 = vld [vmem:[%s1995_s22 + $0xe0] sm:$0xf] }
  0x46   : > { %v1272_v12 = vor.u32 %v1440_v9, %v1269_v10  ;;  %v1439_v15 = vld [vmem:[%s1995_s22 + $0xe4] sm:$0xf0]  ;;  %625 = vmatpush.bf16.msra.mxu1 %v1268_v7  ;;  %v1196_v16 = vor.u32 %v1423_v13, %v1195_v11  ;;  %v1422_v18 = vld [vmem:[%s1995_s22 + $0x64] sm:$0xf]  ;;  %v1197_v19 = vld [vmem:[%s1995_s22 + $0x68] sm:$0xf0] }
  0x47   : > { %639 = vmatpush.bf16.msra.mxu2 %v1208_v8  ;;  %v1260_v17 = vor.u32 %v1439_v15, %v1259_v14  ;;  %v1438_v20 = vld [vmem:[%s1995_s22 + $0xe4] sm:$0xf]  ;;  %v1200_v21 = vor.u32 %v1422_v18, %v1197_v19  ;;  %v1261_v22 = vld [vmem:[%s1995_s22 + $0xe8] sm:$0xf0]  ;;  %v1187_v23 = vld [vmem:[%s1995_s22 + $0x50] sm:$0xf] }
  0x48   : > { %653 = vmatpush.bf16.msra.mxu3 %v1272_v12  ;;  %v1421_v24 = vld [vmem:[%s1995_s22 + $0x54] sm:$0xf0]  ;;  %v1264_v25 = vor.u32 %v1438_v20, %v1261_v22  ;;  %v1251_v26 = vld [vmem:[%s1995_s22 + $0xd0] sm:$0xf]  ;;  %v1420_v28 = vld [vmem:[%s1995_s22 + $0x54] sm:$0xf] }
  0x49   : > { %v1437_v27 = vld [vmem:[%s1995_s22 + $0xd4] sm:$0xf0]  ;;  %612 = vmatpush.bf16.msra.mxu0 %v1196_v16  ;;  %v1188_v29 = vor.u32 %v1421_v24, %v1187_v23  ;;  %v1189_v30 = vld [vmem:[%s1995_s22 + $0x58] sm:$0xf0]  ;;  %v1436_v31 = vld [vmem:[%s1995_s22 + $0xd4] sm:$0xf] }
  0x4a   : > { %v1253_v32 = vld [vmem:[%s1995_s22 + $0xd8] sm:$0xf0]  ;;  %626 = vmatpush.bf16.msra.mxu1 %v1260_v17  ;;  %v1252_v33 = vor.u32 %v1437_v27, %v1251_v26  ;;  %v1192_v34 = vor.u32 %v1420_v28, %v1189_v30  ;;  %v1179_v35 = vld [vmem:[%s1995_s22 + $0x40] sm:$0xf]  ;;  %v1419_v36 = vld [vmem:[%s1995_s22 + $0x44] sm:$0xf0] }
  0x4b   : > { %640 = vmatpush.bf16.msra.mxu2 %v1200_v21  ;;  %v1243_v37 = vld [vmem:[%s1995_s22 + $0xc0] sm:$0xf]  ;;  %v1256_v38 = vor.u32 %v1436_v31, %v1253_v32  ;;  %v1435_v39 = vld [vmem:[%s1995_s22 + $0xc4] sm:$0xf0]  ;;  %v1418_v40 = vld [vmem:[%s1995_s22 + $0x44] sm:$0xf]  ;;  %v1180_v44 = vor.u32 %v1419_v36, %v1179_v35 }
  0x4c   : > { %654 = vmatpush.bf16.msra.mxu3 %v1264_v25  ;;  %v1181_v41 = vld [vmem:[%s1995_s22 + $0x48] sm:$0xf0]  ;;  %v1434_v42 = vld [vmem:[%s1995_s22 + $0xc4] sm:$0xf]  ;;  %v1244_v45 = vor.u32 %v1435_v39, %v1243_v37  ;;  %v1171_v47 = vld [vmem:[%s1995_s22 + $0x30] sm:$0xf] }
  0x4d   : > { %v1245_v43 = vld [vmem:[%s1995_s22 + $0xc8] sm:$0xf0]  ;;  %613 = vmatpush.bf16.msra.mxu0 %v1188_v29  ;;  %v1184_v46 = vor.u32 %v1418_v40, %v1181_v41  ;;  %v1417_v48 = vld [vmem:[%s1995_s22 + $0x34] sm:$0xf0]  ;;  %v1235_v49 = vld [vmem:[%s1995_s22 + $0xb0] sm:$0xf] }
  0x4e   : > { %627 = vmatpush.bf16.msra.mxu1 %v1252_v33  ;;  %v1248_v50 = vor.u32 %v1434_v42, %v1245_v43  ;;  %v1433_v51 = vld [vmem:[%s1995_s22 + $0xb4] sm:$0xf0]  ;;  %v1416_v52 = vld [vmem:[%s1995_s22 + $0x34] sm:$0xf]  ;;  %v1173_v53 = vld [vmem:[%s1995_s22 + $0x38] sm:$0xf0]  ;;  %v1172_v56 = vor.u32 %v1417_v48, %v1171_v47 }
  0x4f   : > { %641 = vmatpush.bf16.msra.mxu2 %v1192_v34  ;;  %v1432_v54 = vld [vmem:[%s1995_s22 + $0xb4] sm:$0xf]  ;;  %v1237_v55 = vld [vmem:[%s1995_s22 + $0xb8] sm:$0xf0]  ;;  %v1236_v57 = vor.u32 %v1433_v51, %v1235_v49  ;;  %v1176_v58 = vor.u32 %v1416_v52, %v1173_v53  ;;  %v1163_v59 = vld [vmem:[%s1995_s22 + $0x20] sm:$0xf] }
  0x50   : > { %655 = vmatpush.bf16.msra.mxu3 %v1256_v38  ;;  %v1415_v60 = vld [vmem:[%s1995_s22 + $0x24] sm:$0xf0]  ;;  %v1227_v61 = vld [vmem:[%s1995_s22 + $0xa0] sm:$0xf]  ;;  %v1240_v62 = vor.u32 %v1432_v54, %v1237_v55  ;;  %v1414_v0 = vld [vmem:[%s1995_s22 + $0x24] sm:$0xf] }
  0x51   : > { %614 = vmatpush.bf16.msra.mxu0 %v1180_v44  ;;  %v1431_v63 = vld [vmem:[%s1995_s22 + $0xa4] sm:$0xf0]  ;;  %v1165_v1 = vld [vmem:[%s1995_s22 + $0x28] sm:$0xf0]  ;;  %v1430_v2 = vld [vmem:[%s1995_s22 + $0xa4] sm:$0xf]  ;;  %v1164_v4 = vor.u32 %v1415_v60, %v1163_v59 }
  0x52   : > { %628 = vmatpush.bf16.msra.mxu1 %v1244_v45  ;;  %v1229_v3 = vld [vmem:[%s1995_s22 + $0xa8] sm:$0xf0]  ;;  %v1228_v5 = vor.u32 %v1431_v63, %v1227_v61  ;;  %v1168_v6 = vor.u32 %v1414_v0, %v1165_v1  ;;  %v1155_v7 = vld [vmem:[%s1995_s22 + $0x10] sm:$0xf]  ;;  %v1413_v8 = vld [vmem:[%s1995_s22 + $0x14] sm:$0xf0] }
  0x53   : > { %642 = vmatpush.bf16.msra.mxu2 %v1184_v46  ;;  %v1219_v9 = vld [vmem:[%s1995_s22 + $0x90] sm:$0xf]  ;;  %v1232_v10 = vor.u32 %v1430_v2, %v1229_v3  ;;  %v1429_v11 = vld [vmem:[%s1995_s22 + $0x94] sm:$0xf0]  ;;  %v1412_v12 = vld [vmem:[%s1995_s22 + $0x14] sm:$0xf]  ;;  %v1156_v16 = vor.u32 %v1413_v8, %v1155_v7 }
  0x54   : > { %656 = vmatpush.bf16.msra.mxu3 %v1248_v50  ;;  %v1157_v13 = vld [vmem:[%s1995_s22 + $0x18] sm:$0xf0]  ;;  %v1428_v14 = vld [vmem:[%s1995_s22 + $0x94] sm:$0xf]  ;;  %v1147_v17 = vld [vmem:[%s1995_s22] sm:$0xf]  ;;  %v1220_v19 = vor.u32 %v1429_v11, %v1219_v9 }
  0x55   : > { %615 = vmatpush.bf16.msra.mxu0 %v1172_v56  ;;  %v1221_v15 = vld [vmem:[%s1995_s22 + $0x98] sm:$0xf0]  ;;  %v1411_v18 = vld [vmem:[%s1995_s22 + $0x4] sm:$0xf0]  ;;  %v1160_v20 = vor.u32 %v1412_v12, %v1157_v13  ;;  %v1211_v21 = vld [vmem:[%s1995_s22 + $0x80] sm:$0xf] }
  0x56   : > { %629 = vmatpush.bf16.msra.mxu1 %v1236_v57  ;;  %v1427_v22 = vld [vmem:[%s1995_s22 + $0x84] sm:$0xf0]  ;;  %v1410_v23 = vld [vmem:[%s1995_s22 + $0x4] sm:$0xf]  ;;  %v1224_v24 = vor.u32 %v1428_v14, %v1221_v15  ;;  %v1149_v25 = vld [vmem:[%s1995_s22 + $0x8] sm:$0xf0]  ;;  %v1148_v31 = vor.u32 %v1411_v18, %v1147_v17 }
  0x57   : > { %643 = vmatpush.bf16.msra.mxu2 %v1176_v58  ;;  %v1426_v26 = vld [vmem:[%s1995_s22 + $0x84] sm:$0xf]  ;;  %v1213_v27 = vld [vmem:[%s1995_s22 + $0x88] sm:$0xf0]  ;;  %v1139_v28 = vld [vmem:[#allocation2] sm:$0xf]  ;;  %v1212_v35 = vor.u32 %v1427_v22, %v1211_v21  ;;  %v1152_v36 = vor.u32 %v1410_v23, %v1149_v25 }
  0x58   : > { %657 = vmatpush.bf16.msra.mxu3 %v1240_v62  ;;  %v1331_v29 = vld [vmem:[%s2006_s14 + $0x70] sm:$0xf]  ;;  %v1457_v30 = vld [vmem:[%s2006_s14 + $0x74] sm:$0xf0]  ;;  %v1409_v32 = vld [vmem:[#allocation2 + $0x4] sm:$0xf0]  ;;  %v1216_v39 = vor.u32 %v1426_v26, %v1213_v27 }
  0x59   : > { %616 = vmatpush.bf16.msra.mxu0 %v1164_v4  ;;  %v1456_v33 = vld [vmem:[%s2006_s14 + $0x74] sm:$0xf]  ;;  %v1333_v34 = vld [vmem:[%s2006_s14 + $0x78] sm:$0xf0]  ;;  %v1408_v37 = vld [vmem:[#allocation2 + $0x4] sm:$0xf]  ;;  %v1332_v40 = vor.u32 %v1457_v30, %v1331_v29  ;;  %v1140_v44 = vor.u32 %v1409_v32, %v1139_v28 }
  0x5a   : > { %630 = vmatpush.bf16.msra.mxu1 %v1228_v5  ;;  %v1141_v38 = vld [vmem:[#allocation2 + $0x8] sm:$0xf0]  ;;  %v1323_v41 = vld [vmem:[%s2006_s14 + $0x60] sm:$0xf]  ;;  %v1395_v42 = vld [vmem:[%s2006_s14 + $0xf0] sm:$0xf]  ;;  %v1336_v45 = vor.u32 %v1456_v33, %v1333_v34 }
  0x5b   : > { %644 = vmatpush.bf16.msra.mxu2 %v1168_v6  ;;  %v1473_v43 = vld [vmem:[%s2006_s14 + $0xf4] sm:$0xf0]  ;;  %v1455_v46 = vld [vmem:[%s2006_s14 + $0x64] sm:$0xf0]  ;;  %v1472_v47 = vld [vmem:[%s2006_s14 + $0xf4] sm:$0xf]  ;;  %v1144_v49 = vor.u32 %v1408_v37, %v1141_v38 }
  0x5c   : > { %658 = vmatpush.bf16.msra.mxu3 %v1232_v10  ;;  %v1397_v48 = vld [vmem:[%s2006_s14 + $0xf8] sm:$0xf0]  ;;  %v1454_v50 = vld [vmem:[%s2006_s14 + $0x64] sm:$0xf]  ;;  %v1325_v51 = vld [vmem:[%s2006_s14 + $0x68] sm:$0xf0]  ;;  %v1396_v52 = vor.u32 %v1473_v43, %v1395_v42  ;;  %v1324_v53 = vor.u32 %v1455_v46, %v1323_v41 }
  0x5d   : > { %617 = vmatpush.bf16.msra.mxu0 %v1156_v16  ;;  %v1400_v54 = vor.u32 %v1472_v47, %v1397_v48  ;;  %v1315_v55 = vld [vmem:[%s2006_s14 + $0x50] sm:$0xf]  ;;  %v1387_v56 = vld [vmem:[%s2006_s14 + $0xe0] sm:$0xf]  ;;  %v1471_v57 = vld [vmem:[%s2006_s14 + $0xe4] sm:$0xf0]  ;;  %v1328_v58 = vor.u32 %v1454_v50, %v1325_v51 }
  0x5e   : > { %631 = vmatpush.bf16.msra.mxu1 %v1220_v19  ;;  %v1453_v59 = vld [vmem:[%s2006_s14 + $0x54] sm:$0xf0]  ;;  %v1470_v60 = vld [vmem:[%s2006_s14 + $0xe4] sm:$0xf]  ;;  %v1389_v61 = vld [vmem:[%s2006_s14 + $0xe8] sm:$0xf0]  ;;  %v1388_v0 = vor.u32 %v1471_v57, %v1387_v56 }
  0x5f   : > { %645 = vmatpush.bf16.msra.mxu2 %v1160_v20  ;;  %v1452_v62 = vld [vmem:[%s2006_s14 + $0x54] sm:$0xf]  ;;  %v1317_v63 = vld [vmem:[%s2006_s14 + $0x58] sm:$0xf0]  ;;  %v1316_v1 = vor.u32 %v1453_v59, %v1315_v55  ;;  %v1392_v2 = vor.u32 %v1470_v60, %v1389_v61  ;;  %v1307_v4 = vld [vmem:[%s2006_s14 + $0x40] sm:$0xf] }
  0x60   : > { %659 = vmatpush.bf16.msra.mxu3 %v1224_v24  ;;  %v1320_v3 = vor.u32 %v1452_v62, %v1317_v63  ;;  %v1451_v5 = vld [vmem:[%s2006_s14 + $0x44] sm:$0xf0]  ;;  %v1450_v6 = vld [vmem:[%s2006_s14 + $0x44] sm:$0xf]  ;;  %v1309_v7 = vld [vmem:[%s2006_s14 + $0x48] sm:$0xf0] }
  0x61   : > { %618 = vmatpush.bf16.msra.mxu0 %v1148_v31  ;;  %v1308_v8 = vor.u32 %v1451_v5, %v1307_v4  ;;  %v1312_v9 = vor.u32 %v1450_v6, %v1309_v7  ;;  %v1379_v10 = vld [vmem:[%s2006_s14 + $0xd0] sm:$0xf]  ;;  %v1469_v11 = vld [vmem:[%s2006_s14 + $0xd4] sm:$0xf0]  ;;  %v1468_v12 = vld [vmem:[%s2006_s14 + $0xd4] sm:$0xf] }
  0x62   : > { %632 = vmatpush.bf16.msra.mxu1 %v1212_v35  ;;  %v1380_v13 = vor.u32 %v1469_v11, %v1379_v10  ;;  %v1381_v14 = vld [vmem:[%s2006_s14 + $0xd8] sm:$0xf0]  ;;  %v1299_v16 = vld [vmem:[%s2006_s14 + $0x30] sm:$0xf]  ;;  %v1449_v17 = vld [vmem:[%s2006_s14 + $0x34] sm:$0xf0] }
  0x63   : > { %646 = vmatpush.bf16.msra.mxu2 %v1152_v36  ;;  %v1384_v15 = vor.u32 %v1468_v12, %v1381_v14  ;;  %v1448_v18 = vld [vmem:[%s2006_s14 + $0x34] sm:$0xf]  ;;  %v1300_v19 = vor.u32 %v1449_v17, %v1299_v16  ;;  %v1301_v20 = vld [vmem:[%s2006_s14 + $0x38] sm:$0xf0]  ;;  %v1371_v22 = vld [vmem:[%s2006_s14 + $0xc0] sm:$0xf] }
  0x64   : > { %660 = vmatpush.bf16.msra.mxu3 %v1216_v39  ;;  %619 = vmatmul.bf16.vlgmr.msra.gmra.mxu0 %v1140_v44  ;;  %v1304_v21 = vor.u32 %v1448_v18, %v1301_v20  ;;  %v1467_v23 = vld [vmem:[%s2006_s14 + $0xc4] sm:$0xf0]  ;;  %v1466_v24 = vld [vmem:[%s2006_s14 + $0xc4] sm:$0xf]  ;;  %v1373_v26 = vld [vmem:[%s2006_s14 + $0xc8] sm:$0xf0] }
  0x65   : > { %871 = vmatpush.bf16.msrb.mxu0 %v1332_v40  ;;  %633 = vmatmul.bf16.vlgmr.msra.gmra.mxu1 %v1144_v49  ;;  %v1372_v25 = vor.u32 %v1467_v23, %v1371_v22  ;;  %v1376_v27 = vor.u32 %v1466_v24, %v1373_v26  ;;  %v1291_v28 = vld [vmem:[%s2006_s14 + $0x20] sm:$0xf]  ;;  %v1447_v29 = vld [vmem:[%s2006_s14 + $0x24] sm:$0xf0]  ;;  %v1446_v31 = vld [vmem:[%s2006_s14 + $0x24] sm:$0xf] }
  0x66   : > { %647 = vmatmul.bf16.vlgmr.msra.gmra.mxu2 %v1140_v44  ;;  %885 = vmatpush.bf16.msrb.mxu1 %v1396_v52  ;;  %v1292_v30 = vor.u32 %v1447_v29, %v1291_v28  ;;  %v1293_v32 = vld [vmem:[%s2006_s14 + $0x28] sm:$0xf0]  ;;  %v1363_v34 = vld [vmem:[%s2006_s14 + $0xb0] sm:$0xf]  ;;  %v1465_v35 = vld [vmem:[%s2006_s14 + $0xb4] sm:$0xf0] }
  0x67   : > { %899 = vmatpush.bf16.msrb.mxu2 %v1336_v45  ;;  %661 = vmatmul.bf16.vlgmr.msra.gmra.mxu3 %v1144_v49  ;;  %v1296_v33 = vor.u32 %v1446_v31, %v1293_v32  ;;  %v1464_v36 = vld [vmem:[%s2006_s14 + $0xb4] sm:$0xf]  ;;  %v1364_v37 = vor.u32 %v1465_v35, %v1363_v34  ;;  %v1365_v38 = vld [vmem:[%s2006_s14 + $0xb8] sm:$0xf0]  ;;  %v1283_v40 = vld [vmem:[%s2006_s14 + $0x10] sm:$0xf] }
  0x68   : > { %913 = vmatpush.bf16.msrb.mxu3 %v1400_v54  ;;  %v1368_v39 = vor.u32 %v1464_v36, %v1365_v38  ;;  %v1445_v41 = vld [vmem:[%s2006_s14 + $0x14] sm:$0xf0]  ;;  %v1444_v42 = vld [vmem:[%s2006_s14 + $0x14] sm:$0xf]  ;;  %v1285_v44 = vld [vmem:[%s2006_s14 + $0x18] sm:$0xf0] }
  0x69   : > { %872 = vmatpush.bf16.msrb.mxu0 %v1324_v53  ;;  %v1284_v43 = vor.u32 %v1445_v41, %v1283_v40  ;;  %v1288_v45 = vor.u32 %v1444_v42, %v1285_v44  ;;  %v1355_v46 = vld [vmem:[%s2006_s14 + $0xa0] sm:$0xf]  ;;  %v1463_v47 = vld [vmem:[%s2006_s14 + $0xa4] sm:$0xf0]  ;;  %v1462_v48 = vld [vmem:[%s2006_s14 + $0xa4] sm:$0xf] }
  0x6a   : > { %886 = vmatpush.bf16.msrb.mxu1 %v1388_v0  ;;  %v1356_v49 = vor.u32 %v1463_v47, %v1355_v46  ;;  %v1357_v50 = vld [vmem:[%s2006_s14 + $0xa8] sm:$0xf0]  ;;  %v1275_v52 = vld [vmem:[%s2006_s14] sm:$0xf]  ;;  %v1443_v53 = vld [vmem:[%s2006_s14 + $0x4] sm:$0xf0] }
  0x6b   : > { %900 = vmatpush.bf16.msrb.mxu2 %v1328_v58  ;;  %v1360_v51 = vor.u32 %v1462_v48, %v1357_v50  ;;  %v1442_v54 = vld [vmem:[%s2006_s14 + $0x4] sm:$0xf]  ;;  %v1276_v55 = vor.u32 %v1443_v53, %v1275_v52  ;;  %v1277_v56 = vld [vmem:[%s2006_s14 + $0x8] sm:$0xf0]  ;;  %v1347_v58 = vld [vmem:[%s2006_s14 + $0x90] sm:$0xf] }
  0x6c   : > { %914 = vmatpush.bf16.msrb.mxu3 %v1392_v2  ;;  %v1280_v57 = vor.u32 %v1442_v54, %v1277_v56  ;;  %v1461_v59 = vld [vmem:[%s2006_s14 + $0x94] sm:$0xf0]  ;;  %v1460_v60 = vld [vmem:[%s2006_s14 + $0x94] sm:$0xf]  ;;  %v1349_v62 = vld [vmem:[%s2006_s14 + $0x98] sm:$0xf0] }
  0x6d   : > { %873 = vmatpush.bf16.msrb.mxu0 %v1316_v1  ;;  %v1348_v61 = vor.u32 %v1461_v59, %v1347_v58  ;;  %v1352_v63 = vor.u32 %v1460_v60, %v1349_v62  ;;  %v1339_v0 = vld [vmem:[%s2006_s14 + $0x80] sm:$0xf]  ;;  %v1459_v1 = vld [vmem:[%s2006_s14 + $0x84] sm:$0xf0]  ;;  %v1458_v2 = vld [vmem:[%s2006_s14 + $0x84] sm:$0xf] }
  0x6e   : > { %887 = vmatpush.bf16.msrb.mxu1 %v1380_v13  ;;  %v1341_v4 = vld [vmem:[%s2006_s14 + $0x88] sm:$0xf0]  ;;  %v435_v6 = vld [vmem:[%s2004_s24] sm:$0x3]  ;;  %v705_v31 = vld [vmem:[%s356_s25] sm:$0x3] }
  0x6f   : > { %901 = vmatpush.bf16.msrb.mxu2 %v1320_v3  ;;  %v1340_v3 = vor.u32 %v1459_v1, %v1339_v0  ;;  %v1344_v5 = vor.u32 %v1458_v2, %v1341_v4  ;;  %v438_v12 = vperm.slane %v435_v6, 1  ;;  %v708_v36 = vperm.slane %v705_v31, 1  ;;  %s1136_s27 = sshll.u32 %s1992_s1, 4  ;;  %s1474_s8 = sshll.u32 %s1799_s21, 4 }
  0x70   : > { %915 = vmatpush.bf16.msrb.mxu3 %v1384_v15  ;;  %s950_s28 = scalar_lea.hbm %s2187_s5, %s1474_s8  ;;  %s398_s13 = scalar_lea.vmem [#allocation11], %s1136_s27 }
  0x71   : > { %874 = vmatpush.bf16.msrb.mxu0 %v1308_v8  ;;  %v437_v8 = vperm.slane %v435_v6, 0  ;;  %s951_s17 = sshll.u32 %s398_s13, 4  ;;  %s953_s26 = sshll.u32 %s950_s28, 4  ;;  %s952_s17 = int_to_ptr.vmem [resolvable:$true] %s951_s17  ;;  %s954_s26 = int_to_ptr.hbm [resolvable:$true] %s953_s26 }
  0x72   : > { %888 = vmatpush.bf16.msrb.mxu1 %v1372_v25  ;;  %s936_s21 = scalar_lea.sflag [#allocation4], %s1992_s1  ;;  %s1731_s10 = sshra.s32 %s954_s26, 4  ;;  %s1732_s10 = int_to_ptr.hbm [resolvable:$true] %s1731_s10 }
  0x73   : > { %902 = vmatpush.bf16.msrb.mxu2 %v1312_v9  ;;  %s1733_s12 = scalar_lea.hbm %s1732_s10, 16  ;;  %s1737_s9 = scalar_lea.hbm %s2187_s5, 32 }
  0x74   : > { %916 = vmatpush.bf16.msrb.mxu3 %v1376_v27  ;;  %p1734_p7 = scmp.ne.s32.totalorder %s1732_s10, %s1733_s12  ;;  %p1738_p10 = scmp.lt.s32.totalorder %s1732_s10, %s2187_s5 }
  0x75   : > { %875 = vmatpush.bf16.msrb.mxu0 %v1300_v19  ;;  %p1739_p11 = scmp.lt.s32.totalorder %s1737_s9, %s1733_s12 }
  0x76   : > { %889 = vmatpush.bf16.msrb.mxu1 %v1364_v37  ;;  %p1735_p8 = pnand %p1734_p7, %p1946_p0 }
  0x77   : > { %903 = vmatpush.bf16.msrb.mxu2 %v1304_v21  ;;  %p1740_p12 = por %p1739_p11, %p1738_p10 }
  0x78   : > { %917 = vmatpush.bf16.msrb.mxu3 %v1368_v39  ;;  %p1736_p9 = pneg %p1735_p8 }
  0x79   : > { %876 = vmatpush.bf16.msrb.mxu0 %v1292_v30 }
  0x7a   : > { %890 = vmatpush.bf16.msrb.mxu1 %v1356_v49  ;;  %p1741_p13 = pnand %p1740_p12, %p1736_p9 }
  0x7b   : > { %904 = vmatpush.bf16.msrb.mxu2 %v1296_v33  ;;  %v707_v33 = vperm.slane %v705_v31, 0 }
  0x7c   : > { %918 = vmatpush.bf16.msrb.mxu3 %v1360_v51 }
  0x7d   : > { %877 = vmatpush.bf16.msrb.mxu0 %v1284_v43 }
  0x7e   : > { %891 = vmatpush.bf16.msrb.mxu1 %v1348_v61 }
  0x7f   : > { %905 = vmatpush.bf16.msrb.mxu2 %v1288_v45 }
  0x80   : > { %919 = vmatpush.bf16.msrb.mxu3 %v1352_v63 }
  0x81   : > { %878 = vmatpush.bf16.msrb.mxu0 %v1276_v55 }
  0x82   : > { %892 = vmatpush.bf16.msrb.mxu1 %v1340_v3 }
  0x83   : > { %906 = vmatpush.bf16.msrb.mxu2 %v1280_v57 }
  0x84   : > { %920 = vmatpush.bf16.msrb.mxu3 %v1344_v5 }
  0xe1   : > { %v620_v7 = vpop.f32.mrf.mxu0 }
  0xe2   : > { %v634_v9 = vpop.f32.mrf.mxu1  ;;  %v621_v10 = vadd.f32 %v620_v7, %v437_v8 }
  0xe4   : > { %v635_v15 = vadd.f32 %v634_v9, %v621_v10 }
  0xe6   : > { %v667_v20 = vmax.f32 %v635_v15, 0.0 }
  0xe9   : > { %v648_v11 = vpop.f32.mrf.mxu2  ;;  %v622_v14 = vpop.f32.mrf.mxu0 }
  0xea   : > { %v662_v13 = vpop.f32.mrf.mxu3  ;;  %v623_v16 = vadd.f32 %v622_v14, %v437_v8  ;;  %v636_v17 = vpop.f32.mrf.mxu1  ;;  %v649_v19 = vadd.f32 %v648_v11, %v438_v12 }
  0xec   : > { %v637_v18 = vadd.f32 %v636_v17, %v623_v16  ;;  %v663_v24 = vadd.f32 %v662_v13, %v649_v19 }
  0xee   : > { %v669_v21 = vmax.f32 %v637_v18, 0.0  ;;  %v668_v28 = vmax.f32 %v663_v24, 0.0 }
  0xf0   : > { %v671_v22 = vpack.c.bf16 %v669_v21, %v667_v20 }
  0xf1   : > { %v650_v23 = vpop.f32.mrf.mxu2 }
  0xf2   : > { %v651_v25 = vadd.f32 %v650_v23, %v438_v12  ;;  %v664_v26 = vpop.f32.mrf.mxu3  ;;  %879 = vmatmul.bf16.vlgmr.msrb.gmra.mxu0 %v671_v22  ;;  %907 = vmatmul.bf16.vlgmr.msrb.gmra.mxu2 %v671_v22 }
  0xf4   : > { %v665_v27 = vadd.f32 %v664_v26, %v651_v25 }
  0xf6   : > { %v670_v29 = vmax.f32 %v665_v27, 0.0 }
  0xf8   : > { %v672_v30 = vpack.c.bf16 %v670_v29, %v668_v28 }
  0xfa   : > { %893 = vmatmul.bf16.vlgmr.msrb.gmra.mxu1 %v672_v30  ;;  %921 = vmatmul.bf16.vlgmr.msrb.gmra.mxu3 %v672_v30 }
 0x16f   : > { %v880_v32 = vpop.f32.mrf.mxu0 }
 0x170   : > { %v881_v37 = vadd.f32 %v880_v32, %v707_v33 }
 0x175   : > { %v908_v35 = vpop.f32.mrf.mxu2 }
 0x176   : > { %v909_v39 = vadd.f32 %v908_v35, %v708_v36 }
 0x177   : > { %v894_v34 = vpop.f32.mrf.mxu1  ;;  %v882_v42 = vpop.f32.mrf.mxu0 }
 0x178   : > { %v895_v38 = vadd.f32 %v894_v34, %v881_v37  ;;  %v883_v47 = vadd.f32 %v882_v42, %v707_v33 }
 0x17a   : > { %v927_v43 = vmax.f32 %v895_v38, 0.0 }
 0x17d   : > { %v922_v40 = vpop.f32.mrf.mxu3  ;;  %v910_v46 = vpop.f32.mrf.mxu2 }
 0x17e   : > { %v923_v41 = vadd.f32 %v922_v40, %v909_v39  ;;  %v911_v50 = vadd.f32 %v910_v46, %v708_v36 }
 0x17f   : > { %v896_v45 = vpop.f32.mrf.mxu1 }
 0x180   : > { %v928_v44 = vmax.f32 %v923_v41, 0.0  ;;  %v897_v49 = vadd.f32 %v896_v45, %v883_v47 }
 0x182   : > { %v931_v48 = vpack.c.bf16 %v928_v44, %v927_v43  ;;  %v929_v53 = vmax.f32 %v897_v49, 0.0 }
 0x184   : > { %933 = vst [vmem:[%s398_s13] sm:$0xff] %v931_v48 }
 0x185   : > { %v924_v51 = vpop.f32.mrf.mxu3 }
 0x186   : > { %v925_v52 = vadd.f32 %v924_v51, %v911_v50 }
 0x188   : > { %v930_v54 = vmax.f32 %v925_v52, 0.0 }
 0x18a   : > { %v932_v55 = vpack.c.bf16 %v930_v54, %v929_v53 }
 0x18c   : > { %934 = vst [vmem:[%s398_s13 + $0x8] sm:$0xff] %v932_v55 }
 0x18d   : > { %1744 = shalt.err (!%p1741_p13)
}
 0x18e   : > { %s1812_s1 = smov 128   ;;  %s1813_s3 = smov 8  }
 0x18f   : > { %1487 = dma.vmem_to_hbm [thread:$0]  (%p1946_p0), %s952_s17, 256, %s954_s26, %s936_s21, %s1812_s1, %s1812_s1, %s1813_s3  }
 0x190 PF: > { %s2217_s22 = sld [smem:[#allocation18_spill]]  ;;  %s968_s23 = sand.u32 1, %s1787_s18  }
 0x191   : > { %p1507_p3 = pnand %p1119_p4, %p1950_p2  ;;  %s969_s24 = scalar_lea.sflag [#allocation4], %s968_s23 }
 0x193   : > { %p1508_p5 = pneg %p1507_p3 }
 0x195   : > { %1782 = dma.done.wait (%p1508_p5), %s969_s24, 256  }
 0x196   : > { %1784 = vsyncadd (%p1508_p5), %s969_s24, 4294967040  ;;  %s25_s23 = sadd.s32 1, %s2217_s22   ;;  %s2218_s30 = sld [smem:[#allocation16_spill]] }
 0x197   : > { %p22_p1 = scmp.ge.s32.totalorder %s25_s23, 4   ;;  %s2219_s20 = sld [smem:[#allocation20_spill]] }
 0x198   : > { %s2220_s21 = sld [smem:[#allocation17_spill]]  ;;  %s2222_s18 = smov %s1791_s19 }
 0x199   : > { %s2221_s22 = sld [smem:[#allocation19_spill]]  ;;  %24 = sbr.rel (!%p22_p1) target bundleno = 13 (0xd), region = 126 }
 0x19c   : > { %s2223_s19 = smov %s2218_s30 }
 0x19e   :  { %975 = vsyncpa [#allocation3], 1 }
 0x19f   :  { %977 = vsyncpa [#allocation3 + $0x1], 1 }
 0x1a0   :  { %978 = vsyncpa [#allocation6], 1 }
 0x1a1   :  { %980 = vsyncpa [#allocation6 + $0x1], 1 }
 0x1a2   :  { %981 = vsyncpa [#allocation9], 1 }
 0x1a3   :  { %983 = vsyncpa [#allocation9 + $0x1], 1 }
 0x1a4   :  { %984 = vsyncpa [#allocation4], 1 }
 0x1a5   :  { %986 = vsyncpa [#allocation4 + $0x1], 1 }

</bundles_post_ra>
